<compile_context>
chip_gen: v7x
topology: tpu7x:2x2x1
jax: 0.10.0
libtpu: 0.0.40
codegen_flags: <defaults>
</compile_context>

<pallas_src>
import functools

import jax
import jax.numpy as jnp
from jax import lax
from jax.experimental import pallas as pl
from jax.experimental.pallas import tpu as pltpu

_LANE = 128
_SUBLANE = 8
_ACC_ROWS = 128          # fixed accumulator height for the unweighted path


def _cdiv(a, b):
    return -(-a // b)


def _round_down(x, m):
    return max(m, (x // m) * m)


@functools.lru_cache(maxsize=1)
def _tpu_generation():
    """Best-effort TPU generation from device_kind (7 -> v7x, 6 -> v6e, 5 -> v5e...)."""
    try:
        kind = jax.devices()[0].device_kind.lower()
    except Exception:
        return 6
    for gen in (7, 6, 5, 4, 3, 2):
        if (f"v{gen}" in kind) or kind.startswith(f"tpu{gen}") or (f"tpu {gen}" in kind):
            return gen
    return 6


@functools.lru_cache(maxsize=1)
def _vmem_capacity_bytes():
    try:
        return int(pltpu.get_tpu_info().vmem_capacity_bytes)
    except Exception:
        return (64 << 20) if _tpu_generation() >= 7 else (128 << 20)


def _target_block_bytes():
    """Per-input streamed block bytes, sized by HBM bandwidth generation."""
    gen = _tpu_generation()
    if gen >= 7:
        return 4 << 20
    if gen == 6:
        return 2 << 20
    return 1 << 20


def _num_tensorcores():
    # Only v7x has 2 TensorCores per chip; on v5e/v6e a core-split axis just wastes DMA.
    return 2 if _tpu_generation() >= 7 else 1


def _compiler_params(est_vmem_bytes, semantics):
    cap = _vmem_capacity_bytes()
    limit = int(min(0.92 * cap, max(32 * 1024 * 1024, 1.3 * est_vmem_bytes)))
    return pltpu.CompilerParams(dimension_semantics=semantics, vmem_limit_bytes=limit)


# ----------------------------- kernels ---------------------------------------


def _weighted_mse_kernel(x_ref, y_ref, w_ref, out_ref, num_ref, den_ref, acc_ref, *,
                         n_batch, n_feat, tile_b, tile_f, tiles_per_core):
    """Grid = (cores, feature-tiles, batch-tiles).  Per feature tile:
         num_f = sum_b w*(x-y)^2 ,  den_f = sum_b w   (accumulated over batch tiles)
       acc (1, tile_f) accumulates num/(den+eps) per lane across feature tiles and is
       reduced once at the very last step of this core's loop."""
    c = pl.program_id(0)            # core-split axis ("parallel", v7x only)
    j = pl.program_id(1)            # feature-tile axis
    k = pl.program_id(2)            # batch-tile axis (innermost reduction)
    last_j = pl.num_programs(1) - 1
    last_k = pl.num_programs(2) - 1

    @pl.when(jnp.logical_and(j == 0, k == 0))
    def _():
        acc_ref[...] = jnp.zeros_like(acc_ref)

    @pl.when(k == 0)
    def _():
        num_ref[...] = jnp.zeros_like(num_ref)
        den_ref[...] = jnp.zeros_like(den_ref)

    # Global offsets of this tile.  The core-split tail may overshoot n_feat; its
    # (clamped, duplicated) block is then fully masked and contributes 0.
    f_start = (c * tiles_per_core + j) * tile_f
    b_start = k * tile_b
    is_edge = jnp.logical_or(f_start + tile_f > n_feat, b_start + tile_b > n_batch)

    def _accumulate(mask):
        x = x_ref[...].astype(jnp.float32)
        y = y_ref[...].astype(jnp.float32)
        w = w_ref[...].astype(jnp.float32)
        d = x - y
        if mask is not None:
            w = jnp.where(mask, w, 0.0)
            d = jnp.where(mask, d, 0.0)
        num_ref[...] += jnp.sum(d * d * w, axis=0, keepdims=True)
        den_ref[...] += jnp.sum(w, axis=0, keepdims=True)

    @pl.when(jnp.logical_not(is_edge))
    def _():                                   # fast path: no iota / selects
        _accumulate(None)

    @pl.when(is_edge)
    def _():                                   # ragged tail: mask invalid rows/lanes
        lane_ok = lax.broadcasted_iota(jnp.int32, (1, tile_f), 1) < (n_feat - f_start)
        row_ok = lax.broadcasted_iota(jnp.int32, (tile_b, 1), 0) < (n_batch - b_start)
        _accumulate(jnp.logical_and(row_ok, lane_ok))

    @pl.when(k == last_k)
    def _():
        # Exact reciprocal keeps parity with the reference divide.
        # TODO(synk): pl.reciprocal(..., approx=True) would move this onto the EUP
        # (~2^-12 rel error) if bit-parity with the reference is not required.
        acc_ref[...] += num_ref[...] * pl.reciprocal(den_ref[...] + jnp.float32(1e-8))

    @pl.when(jnp.logical_and(j == last_j, k == last_k))
    def _():
        partial = jnp.sum(acc_ref[...]) / jnp.float32(n_feat)   # this core's share of .mean()
        out_ref[...] = jnp.full(out_ref.shape, partial, out_ref.dtype)


def _mse_sum_kernel(x_ref, y_ref, out_ref, acc_ref, *,
                    n_rows, tile_r, tiles_per_core, chunks, acc_rows, n_total):
    """Unweighted path on a dense (rows, 128) slab.  The block is consumed in
       (acc_rows, 128) chunks so the f32 accumulator and elementwise temporaries stay
       small while the streamed block itself can be large."""
    c = pl.program_id(0)
    j = pl.program_id(1)

    @pl.when(j == 0)
    def _():
        acc_ref[...] = jnp.zeros_like(acc_ref)

    row0 = (c * tiles_per_core + j) * tile_r
    is_edge = row0 + tile_r > n_rows

    def _chunk(i, masked):
        off = pl.multiple_of(i * acc_rows, acc_rows)
        x = x_ref[pl.ds(off, acc_rows), :].astype(jnp.float32)
        y = y_ref[pl.ds(off, acc_rows), :].astype(jnp.float32)
        d = x - y
        if masked:
            ridx = lax.broadcasted_iota(jnp.int32, (acc_rows, 1), 0) + off
            d = jnp.where(ridx < (n_rows - row0), d, 0.0)
        acc_ref[...] += d * d

    @pl.when(jnp.logical_not(is_edge))
    def _():                                   # fast path: no iota / selects
        @pl.loop(0, chunks)
        def _(i):
            _chunk(i, False)

    @pl.when(is_edge)
    def _():                                   # last (or clamped duplicate) tile
        @pl.loop(0, chunks)
        def _(i):
            _chunk(i, True)

    @pl.when(j == pl.num_programs(1) - 1)
    def _():
        partial = jnp.sum(acc_ref[...]) / jnp.float32(n_total)
        out_ref[...] = jnp.full(out_ref.shape, partial, out_ref.dtype)


# ----------------------------- wrappers ---------------------------------------


def _weighted_path(lg, gt, w):
    B, F = lg.shape
    itemsize = max(lg.dtype.itemsize, gt.dtype.itemsize, w.dtype.itemsize)
    budget = int(0.45 * _vmem_capacity_bytes())       # streams + temps + scratch
    target = _target_block_bytes()

    # --- batch tile (keeps large B from overflowing VMEM) ----------------------
    full_b_cost = (3 * 2 * B * itemsize                       # 3 streams x 2 buffers
                   + 4 * _cdiv(B, _SUBLANE) * _SUBLANE * 4    # f32 elementwise temps
                   + 3 * _SUBLANE * 4) * _LANE                # num/den/acc rows
    if full_b_cost <= budget:
        tile_b = B
    else:
        per_row = 3 * 2 * itemsize + 4 * 4
        tile_b = _round_down((budget // _LANE - 3 * _SUBLANE * 4) // per_row, _SUBLANE)
        tile_b = min(tile_b, _round_down(B, _SUBLANE))
    n_b_tiles = _cdiv(B, tile_b)

    # --- feature tile ----------------------------------------------------------
    padded_b = _cdiv(tile_b, _SUBLANE) * _SUBLANE
    per_lane = 3 * 2 * tile_b * itemsize + 4 * padded_b * 4 + 3 * _SUBLANE * 4
    tile_budget = _round_down(budget // per_lane, _LANE)
    tile_target = _round_down(max(_LANE, target // max(1, tile_b * itemsize)), _LANE)
    f_cap = _cdiv(F, _LANE) * _LANE
    tile_f = max(_LANE, min(f_cap, tile_budget, tile_target))
    n_f_tiles = _cdiv(F, tile_f)

    num_cores = _num_tensorcores() if n_f_tiles >= 2 else 1
    tiles_per_core = _cdiv(n_f_tiles, num_cores)
    grid = (num_cores, tiles_per_core, n_b_tiles)

    in_map = lambda c, j, k, tpc=tiles_per_core, nt=n_f_tiles: (k, jnp.minimum(c * tpc + j, nt - 1))
    in_spec = pl.BlockSpec((tile_b, tile_f), in_map)
    out_spec = pl.BlockSpec((_SUBLANE, _LANE), lambda c, j, k: (c, 0))

    est_vmem = (3 * 2 * tile_b * tile_f * itemsize
                + 4 * padded_b * tile_f * 4
                + 3 * _SUBLANE * tile_f * 4
                + 2 * _SUBLANE * _LANE * 4)
    kernel = functools.partial(_weighted_mse_kernel, n_batch=B, n_feat=F,
                               tile_b=tile_b, tile_f=tile_f,
                               tiles_per_core=tiles_per_core)
    out = pl.pallas_call(
        kernel,
        out_shape=jax.ShapeDtypeStruct((num_cores * _SUBLANE, _LANE), jnp.float32),
        grid_spec=pltpu.PrefetchScalarGridSpec(
            num_scalar_prefetch=0,
            grid=grid,
            in_specs=[in_spec, in_spec, in_spec],
            out_specs=out_spec,
            scratch_shapes=[pltpu.VMEM((1, tile_f), jnp.float32),   # num
                            pltpu.VMEM((1, tile_f), jnp.float32),   # den
                            pltpu.VMEM((1, tile_f), jnp.float32)],  # acc
        ),
        compiler_params=_compiler_params(est_vmem, ("parallel", "arbitrary", "arbitrary")),
        cost_estimate=pl.CostEstimate(
            flops=7 * B * F,
            transcendentals=0,
            bytes_accessed=int(lg.size * lg.dtype.itemsize
                               + gt.size * gt.dtype.itemsize
                               + w.size * w.dtype.itemsize)),
    )(lg, gt, w)
    # one partial (already /n_feat) per core -> sum them
    return jnp.sum(out[::_SUBLANE, 0])


def _unweighted_path(x_flat, y_flat):
    n_total = int(x_flat.shape[0])
    n_pad = _cdiv(n_total, _LANE) * _LANE
    if n_pad != n_total:
        # TODO(synk): sub-128 ragged tail still pads via a full-array copy; a copy-free
        # path would need a 1-D block layout or a 2-D kernel over the natural (R, C) view.
        x_flat = jnp.pad(x_flat, (0, n_pad - n_total))
        y_flat = jnp.pad(y_flat, (0, n_pad - n_total))
    n_rows = n_pad // _LANE
    x = x_flat.reshape(n_rows, _LANE)          # free reshape (contiguous)
    y = y_flat.reshape(n_rows, _LANE)

    itemsize = max(x.dtype.itemsize, y.dtype.itemsize)
    budget = int(0.45 * _vmem_capacity_bytes())
    target = _target_block_bytes()

    per_row = 2 * 2 * _LANE * itemsize                          # 2 streams x 2 buffers
    row_budget = _round_down(budget // per_row, _SUBLANE)
    row_target = _round_down(max(_SUBLANE, target // (_LANE * itemsize)), _SUBLANE)
    tile_cap = max(_SUBLANE, min(row_budget, row_target))
    if n_rows <= tile_cap:
        tile_r, acc_rows, chunks = n_rows, n_rows, 1
    else:
        tile_r = _round_down(tile_cap, _ACC_ROWS)
        acc_rows, chunks = _ACC_ROWS, tile_r // _ACC_ROWS

    n_tiles = _cdiv(n_rows, tile_r)
    num_cores = _num_tensorcores() if n_tiles >= 2 else 1
    tiles_per_core = _cdiv(n_tiles, num_cores)
    grid = (num_cores, tiles_per_core)

    in_map = lambda c, j, tpc=tiles_per_core, nt=n_tiles: (jnp.minimum(c * tpc + j, nt - 1), 0)
    in_spec = pl.BlockSpec((tile_r, _LANE), in_map)
    out_spec = pl.BlockSpec((_SUBLANE, _LANE), lambda c, j: (c, 0))

    est_vmem = (2 * 2 * tile_r * _LANE * itemsize
                + acc_rows * _LANE * 4
                + 4 * _cdiv(acc_rows, _SUBLANE) * _SUBLANE * _LANE * 4
                + 2 * _SUBLANE * _LANE * 4)
    kernel = functools.partial(_mse_sum_kernel, n_rows=n_rows, tile_r=tile_r,
                               tiles_per_core=tiles_per_core, chunks=chunks,
                               acc_rows=acc_rows, n_total=n_total)
    out = pl.pallas_call(
        kernel,
        out_shape=jax.ShapeDtypeStruct((num_cores * _SUBLANE, _LANE), jnp.float32),
        grid_spec=pltpu.PrefetchScalarGridSpec(
            num_scalar_prefetch=0,
            grid=grid,
            in_specs=[in_spec, in_spec],
            out_specs=out_spec,
            scratch_shapes=[pltpu.VMEM((acc_rows, _LANE), jnp.float32)],
        ),
        compiler_params=_compiler_params(est_vmem, ("parallel", "arbitrary")),
        cost_estimate=pl.CostEstimate(
            flops=3 * n_total,
            transcendentals=0,
            bytes_accessed=int(x.size * x.dtype.itemsize + y.size * y.dtype.itemsize)),
    )(x, y)
    return jnp.sum(out[::_SUBLANE, 0])


@jax.jit
def criterion_mse(logits, ground_truth, weights=None):
    """Pallas implementation of Criterion.forward with MSELoss(reduction='none')."""
    b = logits.shape[0]
    if weights is not None:
        return _weighted_path(logits.reshape(b, -1),
                              ground_truth.reshape(b, -1),
                              weights.reshape(b, -1))
    return _unweighted_path(logits.reshape(-1), ground_truth.reshape(-1))


# ----------------------------- reference --------------------------------------


def criterion_mse_ref(logits, ground_truth, weights=None):
    loss = (logits.astype(jnp.float32) - ground_truth.astype(jnp.float32)) ** 2
    if weights is not None:
        w = weights.astype(jnp.float32)
        loss = loss * w
        loss = loss.sum(axis=0) / (w.sum(axis=0) + 1e-8)
    return loss.mean()


# ----------------------------- demo --------------------------------------------


if __name__ == "__main__":
    key = jax.random.PRNGKey(0)
    k1, k2, k3 = jax.random.split(key, 3)

    # NCHW-style inputs: batch=2, channels=4, spatial=16x16 -> flattened to [2, 1024]
    logits = jax.random.normal(k1, (2, 4, 16, 16), dtype=jnp.float32)
    ground_truth = jax.random.normal(k2, (2, 4, 16, 16), dtype=jnp.float32)
    weights = jax.random.uniform(k3, (2, 4, 16, 16), dtype=jnp.float32)

    # Weighted path
    out_w = jax.block_until_ready(criterion_mse(logits, ground_truth, weights))
    ref_w = criterion_mse_ref(logits, ground_truth, weights)
    assert jnp.allclose(out_w, ref_w, rtol=1e-5, atol=1e-5), (out_w, ref_w)

    # Unweighted path
    out_u = jax.block_until_ready(criterion_mse(logits, ground_truth, None))
    ref_u = criterion_mse_ref(logits, ground_truth, None)
    assert jnp.allclose(out_u, ref_u, rtol=1e-5, atol=1e-5), (out_u, ref_u)

    print("KERNEL_OK")
</pallas_src>

<mosaic_0001>
module attributes {stable_mosaic.version = 11 : i64} {
  func.func @_weighted_mse_kernel(%arg0: i32, %arg1: i32, %arg2: i32, %arg3: memref<2x1024xf32, #tpu.memory_space<vmem>>, %arg4: memref<2x1024xf32, #tpu.memory_space<vmem>>, %arg5: memref<2x1024xf32, #tpu.memory_space<vmem>>, %arg6: memref<8x128xf32, #tpu.memory_space<vmem>>, %arg7: memref<1x1024xf32, #tpu.memory_space<vmem>>, %arg8: memref<1x1024xf32, #tpu.memory_space<vmem>>, %arg9: memref<1x1024xf32, #tpu.memory_space<vmem>>) attributes {dimension_semantics = [#tpu.dimension_semantics<parallel>, #tpu.dimension_semantics<arbitrary>, #tpu.dimension_semantics<arbitrary>], iteration_bounds = array<i64: 1, 1, 1>, scalar_prefetch = 0 : i64, scratch_operands = 3 : i64, tpu.core_type = #tpu.core_type<tc>, window_params = [{transform_indices = @transform_0, window_bounds = array<i64: 2, 1024>}, {transform_indices = @transform_1, window_bounds = array<i64: 2, 1024>}, {transform_indices = @transform_2, window_bounds = array<i64: 2, 1024>}, {transform_indices = @transform_3, window_bounds = array<i64: 8, 128>}]} {
    %c0_i32 = arith.constant 0 : i32
    %0 = arith.cmpi eq, %arg1, %c0_i32 : i32
    %c0_i32_0 = arith.constant 0 : i32
    %1 = arith.cmpi eq, %arg2, %c0_i32_0 : i32
    %2 = arith.andi %0, %1 : i1
    %3 = arith.extui %2 : i1 to i32
    %c0_i32_1 = arith.constant 0 : i32
    %4 = arith.cmpi ne, %3, %c0_i32_1 : i32
    scf.if %4 {
      %cst = arith.constant 0.000000e+00 : f32
      %30 = vector.broadcast %cst : f32 to vector<1x1024xf32>
      %c0 = arith.constant 0 : index
      %c0_15 = arith.constant 0 : index
      %31 = vector.load %arg9[%c0, %c0_15] : memref<1x1024xf32, #tpu.memory_space<vmem>>, vector<1x1024xf32>
      tpu.vector_store %arg9[%c0, %c0_15], %30 {strides = array<i32>} : memref<1x1024xf32, #tpu.memory_space<vmem>>, vector<1x1024xf32>,
    } else {
    }
    %c0_i32_2 = arith.constant 0 : i32
    %5 = arith.cmpi eq, %arg2, %c0_i32_2 : i32
    %6 = arith.extui %5 : i1 to i32
    %c0_i32_3 = arith.constant 0 : i32
    %7 = arith.cmpi ne, %6, %c0_i32_3 : i32
    scf.if %7 {
      %cst = arith.constant 0.000000e+00 : f32
      %30 = vector.broadcast %cst : f32 to vector<1x1024xf32>
      %c0 = arith.constant 0 : index
      %c0_15 = arith.constant 0 : index
      %31 = vector.load %arg7[%c0, %c0_15] : memref<1x1024xf32, #tpu.memory_space<vmem>>, vector<1x1024xf32>
      tpu.vector_store %arg7[%c0, %c0_15], %30 {strides = array<i32>} : memref<1x1024xf32, #tpu.memory_space<vmem>>, vector<1x1024xf32>,
      %cst_16 = arith.constant 0.000000e+00 : f32
      %32 = vector.broadcast %cst_16 : f32 to vector<1x1024xf32>
      %c0_17 = arith.constant 0 : index
      %c0_18 = arith.constant 0 : index
      %33 = vector.load %arg8[%c0_17, %c0_18] : memref<1x1024xf32, #tpu.memory_space<vmem>>, vector<1x1024xf32>
      tpu.vector_store %arg8[%c0_17, %c0_18], %32 {strides = array<i32>} : memref<1x1024xf32, #tpu.memory_space<vmem>>, vector<1x1024xf32>,
    } else {
    }
    %c1_i32 = arith.constant 1 : i32
    %8 = arith.muli %arg0, %c1_i32 : i32
    %9 = arith.addi %8, %arg1 : i32
    %c1024_i32 = arith.constant 1024 : i32
    %10 = arith.muli %9, %c1024_i32 : i32
    %c2_i32 = arith.constant 2 : i32
    %11 = arith.muli %arg2, %c2_i32 : i32
    %c1024_i32_4 = arith.constant 1024 : i32
    %12 = arith.addi %10, %c1024_i32_4 : i32
    %c1024_i32_5 = arith.constant 1024 : i32
    %13 = arith.cmpi sgt, %12, %c1024_i32_5 : i32
    %c2_i32_6 = arith.constant 2 : i32
    %14 = arith.addi %11, %c2_i32_6 : i32
    %c2_i32_7 = arith.constant 2 : i32
    %15 = arith.cmpi sgt, %14, %c2_i32_7 : i32
    %16 = arith.ori %13, %15 : i1
    %true = arith.constant true
    %17 = arith.xori %16, %true : i1
    %18 = arith.extui %17 : i1 to i32
    %c0_i32_8 = arith.constant 0 : i32
    %19 = arith.cmpi ne, %18, %c0_i32_8 : i32
    scf.if %19 {
      %c0 = arith.constant 0 : index
      %c0_15 = arith.constant 0 : index
      %30 = vector.load %arg3[%c0, %c0_15] : memref<2x1024xf32, #tpu.memory_space<vmem>>, vector<2x1024xf32>
      %c0_16 = arith.constant 0 : index
      %c0_17 = arith.constant 0 : index
      %31 = vector.load %arg4[%c0_16, %c0_17] : memref<2x1024xf32, #tpu.memory_space<vmem>>, vector<2x1024xf32>
      %c0_18 = arith.constant 0 : index
      %c0_19 = arith.constant 0 : index
      %32 = vector.load %arg5[%c0_18, %c0_19] : memref<2x1024xf32, #tpu.memory_space<vmem>>, vector<2x1024xf32>
      %33 = arith.subf %30, %31 : vector<2x1024xf32>
      %c0_20 = arith.constant 0 : index
      %c0_21 = arith.constant 0 : index
      %34 = vector.load %arg7[%c0_20, %c0_21] : memref<1x1024xf32, #tpu.memory_space<vmem>>, vector<1x1024xf32>
      %35 = arith.mulf %33, %33 : vector<2x1024xf32>
      %36 = arith.mulf %35, %32 : vector<2x1024xf32>
      %cst = arith.constant dense<0.000000e+00> : vector<1024xf32>
      %37 = vector.multi_reduction <add>, %36, %cst [0] : vector<2x1024xf32> to vector<1024xf32>
      %38 = vector.shape_cast %37 : vector<1024xf32> to vector<1x1024xf32>
      %39 = arith.addf %34, %38 : vector<1x1024xf32>
      %c0_22 = arith.constant 0 : index
      %c0_23 = arith.constant 0 : index
      %40 = vector.load %arg7[%c0_22, %c0_23] : memref<1x1024xf32, #tpu.memory_space<vmem>>, vector<1x1024xf32>
      tpu.vector_store %arg7[%c0_22, %c0_23], %39 {strides = array<i32>} : memref<1x1024xf32, #tpu.memory_space<vmem>>, vector<1x1024xf32>,
      %c0_24 = arith.constant 0 : index
      %c0_25 = arith.constant 0 : index
      %41 = vector.load %arg8[%c0_24, %c0_25] : memref<1x1024xf32, #tpu.memory_space<vmem>>, vector<1x1024xf32>
      %cst_26 = arith.constant dense<0.000000e+00> : vector<1024xf32>
      %42 = vector.multi_reduction <add>, %32, %cst_26 [0] : vector<2x1024xf32> to vector<1024xf32>
      %43 = vector.shape_cast %42 : vector<1024xf32> to vector<1x1024xf32>
      %44 = arith.addf %41, %43 : vector<1x1024xf32>
      %c0_27 = arith.constant 0 : index
      %c0_28 = arith.constant 0 : index
      %45 = vector.load %arg8[%c0_27, %c0_28] : memref<1x1024xf32, #tpu.memory_space<vmem>>, vector<1x1024xf32>
      tpu.vector_store %arg8[%c0_27, %c0_28], %44 {strides = array<i32>} : memref<1x1024xf32, #tpu.memory_space<vmem>>, vector<1x1024xf32>,
    } else {
    }
    %20 = arith.extui %16 : i1 to i32
    %c0_i32_9 = arith.constant 0 : i32
    %21 = arith.cmpi ne, %20, %c0_i32_9 : i32
    scf.if %21 {
      %30 = tpu.iota {dimensions = array<i32: 1>} : vector<1x1024xi32>
      %c1024_i32_15 = arith.constant 1024 : i32
      %31 = arith.subi %c1024_i32_15, %10 : i32
      %32 = vector.broadcast %31 : i32 to vector<1x1024xi32>
      %33 = arith.cmpi slt, %30, %32 : vector<1x1024xi32>
      %34 = tpu.iota {dimensions = array<i32: 0>} : vector<2x1xi32>
      %c2_i32_16 = arith.constant 2 : i32
      %35 = arith.subi %c2_i32_16, %11 : i32
      %36 = vector.broadcast %35 : i32 to vector<2x1xi32>
      %37 = arith.cmpi slt, %34, %36 : vector<2x1xi32>
      %38 = vector.broadcast %37 : vector<2x1xi1> to vector<2x1024xi1>
      %39 = vector.broadcast %33 : vector<1x1024xi1> to vector<2x1024xi1>
      %40 = arith.andi %38, %39 : vector<2x1024xi1>
      %c0 = arith.constant 0 : index
      %c0_17 = arith.constant 0 : index
      %41 = vector.load %arg3[%c0, %c0_17] : memref<2x1024xf32, #tpu.memory_space<vmem>>, vector<2x1024xf32>
      %c0_18 = arith.constant 0 : index
      %c0_19 = arith.constant 0 : index
      %42 = vector.load %arg4[%c0_18, %c0_19] : memref<2x1024xf32, #tpu.memory_space<vmem>>, vector<2x1024xf32>
      %c0_20 = arith.constant 0 : index
      %c0_21 = arith.constant 0 : index
      %43 = vector.load %arg5[%c0_20, %c0_21] : memref<2x1024xf32, #tpu.memory_space<vmem>>, vector<2x1024xf32>
      %44 = arith.subf %41, %42 : vector<2x1024xf32>
      %cst = arith.constant 0.000000e+00 : f32
      %45 = vector.broadcast %cst : f32 to vector<2x1024xf32>
      %46 = arith.select %40, %43, %45 : vector<2x1024xi1>, vector<2x1024xf32>
      %cst_22 = arith.constant 0.000000e+00 : f32
      %47 = vector.broadcast %cst_22 : f32 to vector<2x1024xf32>
      %48 = arith.select %40, %44, %47 : vector<2x1024xi1>, vector<2x1024xf32>
      %c0_23 = arith.constant 0 : index
      %c0_24 = arith.constant 0 : index
      %49 = vector.load %arg7[%c0_23, %c0_24] : memref<1x1024xf32, #tpu.memory_space<vmem>>, vector<1x1024xf32>
      %50 = arith.mulf %48, %48 : vector<2x1024xf32>
      %51 = arith.mulf %50, %46 : vector<2x1024xf32>
      %cst_25 = arith.constant dense<0.000000e+00> : vector<1024xf32>
      %52 = vector.multi_reduction <add>, %51, %cst_25 [0] : vector<2x1024xf32> to vector<1024xf32>
      %53 = vector.shape_cast %52 : vector<1024xf32> to vector<1x1024xf32>
      %54 = arith.addf %49, %53 : vector<1x1024xf32>
      %c0_26 = arith.constant 0 : index
      %c0_27 = arith.constant 0 : index
      %55 = vector.load %arg7[%c0_26, %c0_27] : memref<1x1024xf32, #tpu.memory_space<vmem>>, vector<1x1024xf32>
      tpu.vector_store %arg7[%c0_26, %c0_27], %54 {strides = array<i32>} : memref<1x1024xf32, #tpu.memory_space<vmem>>, vector<1x1024xf32>,
      %c0_28 = arith.constant 0 : index
      %c0_29 = arith.constant 0 : index
      %56 = vector.load %arg8[%c0_28, %c0_29] : memref<1x1024xf32, #tpu.memory_space<vmem>>, vector<1x1024xf32>
      %cst_30 = arith.constant dense<0.000000e+00> : vector<1024xf32>
      %57 = vector.multi_reduction <add>, %46, %cst_30 [0] : vector<2x1024xf32> to vector<1024xf32>
      %58 = vector.shape_cast %57 : vector<1024xf32> to vector<1x1024xf32>
      %59 = arith.addf %56, %58 : vector<1x1024xf32>
      %c0_31 = arith.constant 0 : index
      %c0_32 = arith.constant 0 : index
      %60 = vector.load %arg8[%c0_31, %c0_32] : memref<1x1024xf32, #tpu.memory_space<vmem>>, vector<1x1024xf32>
      tpu.vector_store %arg8[%c0_31, %c0_32], %59 {strides = array<i32>} : memref<1x1024xf32, #tpu.memory_space<vmem>>, vector<1x1024xf32>,
    } else {
    }
    %c0_i32_10 = arith.constant 0 : i32
    %22 = arith.cmpi eq, %arg2, %c0_i32_10 : i32
    %23 = arith.extui %22 : i1 to i32
    %c0_i32_11 = arith.constant 0 : i32
    %24 = arith.cmpi ne, %23, %c0_i32_11 : i32
    scf.if %24 {
      %c0 = arith.constant 0 : index
      %c0_15 = arith.constant 0 : index
      %30 = vector.load %arg9[%c0, %c0_15] : memref<1x1024xf32, #tpu.memory_space<vmem>>, vector<1x1024xf32>
      %c0_16 = arith.constant 0 : index
      %c0_17 = arith.constant 0 : index
      %31 = vector.load %arg7[%c0_16, %c0_17] : memref<1x1024xf32, #tpu.memory_space<vmem>>, vector<1x1024xf32>
      %c0_18 = arith.constant 0 : index
      %c0_19 = arith.constant 0 : index
      %32 = vector.load %arg8[%c0_18, %c0_19] : memref<1x1024xf32, #tpu.memory_space<vmem>>, vector<1x1024xf32>
      %cst = arith.constant 9.99999993E-9 : f32
      %33 = vector.broadcast %cst : f32 to vector<1x1024xf32>
      %34 = arith.addf %32, %33 : vector<1x1024xf32>
      %35 = tpu.reciprocal %34 : vector<1x1024xf32> -> vector<1x1024xf32>
      %36 = arith.mulf %31, %35 : vector<1x1024xf32>
      %37 = arith.addf %30, %36 : vector<1x1024xf32>
      %c0_20 = arith.constant 0 : index
      %c0_21 = arith.constant 0 : index
      %38 = vector.load %arg9[%c0_20, %c0_21] : memref<1x1024xf32, #tpu.memory_space<vmem>>, vector<1x1024xf32>
      tpu.vector_store %arg9[%c0_20, %c0_21], %37 {strides = array<i32>} : memref<1x1024xf32, #tpu.memory_space<vmem>>, vector<1x1024xf32>,
    } else {
    }
    %c0_i32_12 = arith.constant 0 : i32
    %25 = arith.cmpi eq, %arg1, %c0_i32_12 : i32
    %c0_i32_13 = arith.constant 0 : i32
    %26 = arith.cmpi eq, %arg2, %c0_i32_13 : i32
    %27 = arith.andi %25, %26 : i1
    %28 = arith.extui %27 : i1 to i32
    %c0_i32_14 = arith.constant 0 : i32
    %29 = arith.cmpi ne, %28, %c0_i32_14 : i32
    scf.if %29 {
      %c0 = arith.constant 0 : index
      %c0_15 = arith.constant 0 : index
      %30 = vector.load %arg9[%c0, %c0_15] : memref<1x1024xf32, #tpu.memory_space<vmem>>, vector<1x1024xf32>
      %31 = vector.shape_cast %30 : vector<1x1024xf32> to vector<1x1x1024xf32>
      %cst = arith.constant dense<0.000000e+00> : vector<1xf32>
      %32 = vector.multi_reduction <add>, %31, %cst [1, 2] : vector<1x1x1024xf32> to vector<1xf32>
      %33 = vector.shape_cast %32 : vector<1xf32> to vector<1x1x1xf32>
      %34 = vector.extract %33[0, 0, 0] : f32 from vector<1x1x1xf32>
      %cst_16 = arith.constant 1.024000e+03 : f32
      %35 = arith.divf %34, %cst_16 : f32
      %36 = vector.broadcast %35 : f32 to vector<8x128xf32>
      %c0_17 = arith.constant 0 : index
      %c0_18 = arith.constant 0 : index
      %37 = vector.load %arg6[%c0_17, %c0_18] : memref<8x128xf32, #tpu.memory_space<vmem>>, vector<8x128xf32>
      tpu.vector_store %arg6[%c0_17, %c0_18], %36 {strides = array<i32>} : memref<8x128xf32, #tpu.memory_space<vmem>>, vector<8x128xf32>,
    } else {
    }
    return
  }
  func.func @transform_0(%arg0: i32, %arg1: i32, %arg2: i32) -> (i32, i32) {
    %c1_i32 = arith.constant 1 : i32
    %0 = arith.muli %arg0, %c1_i32 : i32
    %1 = arith.addi %0, %arg1 : i32
    %c0_i32 = arith.constant 0 : i32
    %2 = arith.minsi %1, %c0_i32 : i32
    %c0_i32_0 = arith.constant 0 : i32
    return %arg2, %2 : i32, i32
  }
  func.func @transform_1(%arg0: i32, %arg1: i32, %arg2: i32) -> (i32, i32) {
    %c1_i32 = arith.constant 1 : i32
    %0 = arith.muli %arg0, %c1_i32 : i32
    %1 = arith.addi %0, %arg1 : i32
    %c0_i32 = arith.constant 0 : i32
    %2 = arith.minsi %1, %c0_i32 : i32
    %c0_i32_0 = arith.constant 0 : i32
    return %arg2, %2 : i32, i32
  }
  func.func @transform_2(%arg0: i32, %arg1: i32, %arg2: i32) -> (i32, i32) {
    %c1_i32 = arith.constant 1 : i32
    %0 = arith.muli %arg0, %c1_i32 : i32
    %1 = arith.addi %0, %arg1 : i32
    %c0_i32 = arith.constant 0 : i32
    %2 = arith.minsi %1, %c0_i32 : i32
    %c0_i32_0 = arith.constant 0 : i32
    return %arg2, %2 : i32, i32
  }
  func.func @transform_3(%arg0: i32, %arg1: i32, %arg2: i32) -> (i32, i32) {
    %c0_i32 = arith.constant 0 : i32
    %c0_i32_0 = arith.constant 0 : i32
    return %arg0, %c0_i32 : i32, i32
  }
}

</mosaic_0001>

<bundles_post_ra>
// kernel: criterion_mse.1
= control target key start
LH: loop header
LB: loop body
LE: loop exit
PB: predicated region body
PF: predicated region fallthrough
CT: control target
= control target key end

     0   :  { %v568_v0 = vlaneseq  ;;  %v999_v4 = vmov 1983009808   ;;  %vm606_vm0 = vcmask 1041408   ;;  %v1000_v30 = vmov 1966171168   ;;  %s1110_s0 = inlined_call_operand.vmem [shape: f32[2,1024], index: 0, kind: input, shape index: {}]   ;;  %s1111_s1 = inlined_call_operand.vmem [shape: f32[2,1024], index: 1, kind: input, shape index: {}]   ;;  %s1112_s2 = inlined_call_operand.vmem [shape: f32[2,1024], index: 2, kind: input, shape index: {}]   ;;  %s1113_s3 = inlined_call_operand.vmem [shape: f32[8,128], index: 3, kind: output, shape index: {}]  }
   0x1   :  { %v549_v1 = vld [vmem:[%s1110_s0] sm:$0xff]  ;;  %v550_v2 = vld [vmem:[%s1110_s0 + $0x8] sm:$0xff]  ;;  %v566_v5 = vunpack.c.l.s4 %v999_v4  ;;  %v676_v31 = vunpack.c.l.s4 %v1000_v30  ;;  %vm939_vm1 = vcmask 1040384  }
   0x2   :  { %v551_v3 = vld [vmem:[%s1111_s1] sm:$0xff]  ;;  %v552_v6 = vld [vmem:[%s1111_s1 + $0x8] sm:$0xff]  ;;  %v1033_v8 = vshrl.u32 %v568_v0, 7 }
   0x3   :  { %v555_v7 = vsub.f32 %v549_v1, %v551_v3  ;;  %v556_v9 = vsub.f32 %v550_v2, %v552_v6  ;;  %v567_v10 = vunpack.c.0.s8 %v566_v5  ;;  %v553_v12 = vld [vmem:[%s1112_s2] sm:$0xff]  ;;  %v554_v16 = vld [vmem:[%s1112_s2 + $0x8] sm:$0xff]  ;;  %v677_v41 = vunpack.c.0.s8 %v676_v31 }
   0x4   :  { %v726_v33 = vcombine.high %v553_v12, %v553_v12  ;;  %v743_v42 = vcombine.high %v554_v16, %v554_v16 }
   0x5   :  { %v558_v11 = vmul.f32 %v555_v7, %v555_v7  ;;  %v559_v13 = vmul.f32 %v556_v9, %v556_v9  ;;  %v570_v15 = vsub.s32 %v567_v10, %v1033_v8  ;;  %v1050_v55 = vsub.s32 %v677_v41, %v1033_v8 }
   0x7   :  { %v560_v14 = vmul.f32 %v558_v11, %v553_v12  ;;  %v561_v17 = vmul.f32 %v559_v13, %v554_v16  ;;  %v733_v36 = vrot.slane %v553_v12, %v570_v15  ;;  %v740_v44 = vrot.slane %v726_v33, %v570_v15 }
   0x8   :  { %v750_v45 = vrot.slane %v554_v16, %v570_v15  ;;  %v757_v56 = vrot.slane %v743_v42, %v570_v15 }
   0x9   :  { %v564_v18 = vcombine.high %v560_v14, %v560_v14  ;;  %v571_v19 = vrot.slane %v560_v14, %v570_v15  ;;  %v588_v20 = vrot.slane %v561_v17, %v570_v15  ;;  %v581_v25 = vcombine.high %v561_v17, %v561_v17 }
   0xa   :  { %v741_v48 = vcombine.high %v733_v36, %v733_v36  ;;  %v742_v58 = vcombine.high %v740_v44, %v740_v44  ;;  %v758_v59 = vcombine.high %v750_v45, %v750_v45  ;;  %v768_v60 = vsel %vm606_vm0, %v733_v36, 0.0 }
   0xb   :  { %v579_v21 = vcombine.high %v571_v19, %v571_v19  ;;  %v607_v22 = vsel %vm606_vm0, %v571_v19, 0.0  ;;  %v578_v23 = vrot.slane %v564_v18, %v570_v15  ;;  %v635_v24 = vsel %vm606_vm0, %v588_v20, 0.0 }
   0xc   :  { %v608_v26 = vrot.slane %v607_v22, 4  ;;  %v636_v29 = vrot.slane %v635_v24, 4  ;;  %v595_v34 = vrot.slane %v581_v25, %v570_v15  ;;  %v596_v35 = vcombine.high %v588_v20, %v588_v20 }
   0xd   :  { %v614_v27 = vsel %vm606_vm0, %v579_v21, 0.0  ;;  %v621_v28 = vsel %vm606_vm0, %v578_v23, 0.0  ;;  %v580_v32 = vcombine.high %v578_v23, %v578_v23  ;;  %v769_v63 = vrot.slane %v768_v60, 4 }
   0xe   :  { %v609_v37 = vadd.f32 %v608_v26, %v607_v22  ;;  %v615_v38 = vrot.slane %v614_v27, 4  ;;  %v622_v39 = vrot.slane %v621_v28, 4  ;;  %v637_v40 = vadd.f32 %v636_v29, %v635_v24 }
   0xf   :  { %v628_v43 = vsel %vm606_vm0, %v580_v32, 0.0  ;;  %v597_v46 = vcombine.high %v595_v34, %v595_v34  ;;  %v642_v47 = vsel %vm606_vm0, %v596_v35, 0.0  ;;  %v649_v52 = vsel %vm606_vm0, %v595_v34, 0.0 }
  0x10   :  { %v610_v49 = vrot.slane %v609_v37, 2  ;;  %v616_v50 = vadd.f32 %v615_v38, %v614_v27  ;;  %v623_v51 = vadd.f32 %v622_v39, %v621_v28  ;;  %v629_v53 = vrot.slane %v628_v43, 4 }
  0x11   :  { %v638_v54 = vrot.slane %v637_v40, 2  ;;  %v643_v57 = vrot.slane %v642_v47, 4  ;;  %v650_v61 = vrot.slane %v649_v52, 4  ;;  %v656_v62 = vsel %vm606_vm0, %v597_v46, 0.0 }
  0x12   :  { %v775_v0 = vsel %vm606_vm0, %v741_v48, 0.0  ;;  %v1055_v1 = vadd.f32 %v610_v49, %v609_v37  ;;  %v617_v2 = vrot.slane %v616_v50, 2  ;;  %v624_v3 = vrot.slane %v623_v51, 2 }
  0x13   :  { %v776_v4 = vrot.slane %v775_v0, 4  ;;  %v630_v5 = vadd.f32 %v629_v53, %v628_v43  ;;  %v1057_v6 = vadd.f32 %v638_v54, %v637_v40  ;;  %v770_v7 = vadd.f32 %v769_v63, %v768_v60 }
  0x14   :  { %v782_v9 = vsel %vm606_vm0, %v740_v44, 0.0  ;;  %v644_v10 = vadd.f32 %v643_v57, %v642_v47  ;;  %v657_v11 = vrot.slane %v656_v62, 4  ;;  %v651_v14 = vadd.f32 %v650_v61, %v649_v52 }
  0x15   :  { %v777_v12 = vadd.f32 %v776_v4, %v775_v0  ;;  %v783_v13 = vrot.slane %v782_v9, 4  ;;  %v771_v15 = vrot.slane %v770_v7, 2  ;;  %v789_v16 = vsel %vm606_vm0, %v742_v58, 0.0 }
  0x16   :  { %v796_v17 = vsel %vm606_vm0, %v750_v45, 0.0  ;;  %v612_v18 = vrot.slane %v1055_v1, 1  ;;  %v1063_v19 = vadd.f32 %v617_v2, %v616_v50  ;;  %v1065_v22 = vadd.f32 %v624_v3, %v623_v51 }
  0x17   :  { %v778_v20 = vrot.slane %v777_v12, 2  ;;  %v784_v21 = vadd.f32 %v783_v13, %v782_v9  ;;  %v772_v23 = vadd.f32 %v771_v15, %v770_v7  ;;  %v790_v24 = vrot.slane %v789_v16, 4 }
  0x18   :  { %v797_v25 = vrot.slane %v796_v17, 4  ;;  %v658_v26 = vadd.f32 %v657_v11, %v656_v62  ;;  %v803_v29 = vsel %vm606_vm0, %v758_v59, 0.0  ;;  %v631_v30 = vrot.slane %v630_v5, 2 }
  0x19   :  { %v779_v27 = vadd.f32 %v778_v20, %v777_v12  ;;  %v785_v28 = vrot.slane %v784_v21, 2  ;;  %v759_v31 = vcombine.high %v757_v56, %v757_v56  ;;  %v791_v32 = vadd.f32 %v790_v24, %v789_v16 }
  0x1a   :  { %v798_v33 = vadd.f32 %v797_v25, %v796_v17  ;;  %v773_v34 = vrot.slane %v772_v23, 1  ;;  %v804_v37 = vrot.slane %v803_v29, 4  ;;  %v645_v38 = vrot.slane %v644_v10, 2 }
  0x1b   :  { %v780_v35 = vrot.slane %v779_v27, 1  ;;  %v786_v36 = vadd.f32 %v785_v28, %v784_v21  ;;  %v792_v39 = vrot.slane %v791_v32, 2  ;;  %v810_v41 = vsel %vm606_vm0, %v757_v56, 0.0 }
  0x1c   :  { %v799_v40 = vrot.slane %v798_v33, 2  ;;  %v652_v42 = vrot.slane %v651_v14, 2  ;;  %v659_v43 = vrot.slane %v658_v26, 2  ;;  %v805_v45 = vadd.f32 %v804_v37, %v803_v29 }
  0x1d   :  { %v787_v44 = vrot.slane %v786_v36, 1  ;;  %v793_v46 = vadd.f32 %v792_v39, %v791_v32  ;;  %v811_v48 = vrot.slane %v810_v41, 4  ;;  %v817_v49 = vsel %vm606_vm0, %v759_v31, 0.0 }
  0x1e   :  { %v800_v47 = vadd.f32 %v799_v40, %v798_v33  ;;  %v774_v50 = vadd.f32 %v773_v34, %v772_v23  ;;  %v781_v51 = vadd.f32 %v780_v35, %v779_v27  ;;  %v806_v52 = vrot.slane %v805_v45, 2 }
  0x1f   :  { %v818_v53 = vrot.slane %v817_v49, 4  ;;  %v788_v54 = vadd.f32 %v787_v44, %v786_v36  ;;  %v794_v57 = vrot.slane %v793_v46, 1  ;;  %v812_v59 = vadd.f32 %v811_v48, %v810_v41 }
  0x20   :  { %v801_v58 = vrot.slane %v800_v47, 1  ;;  %v632_v60 = vadd.f32 %v631_v30, %v630_v5  ;;  %v646_v61 = vadd.f32 %v645_v38, %v644_v10  ;;  %v807_v56 = vadd.f32 %v806_v52, %v805_v45 }
  0x21   :  { %v819_v62 = vadd.f32 %v818_v53, %v817_v49  ;;  %v653_v63 = vadd.f32 %v652_v42, %v651_v14  ;;  %v660_v0 = vadd.f32 %v659_v43, %v658_v26  ;;  %v795_v2 = vadd.f32 %v794_v57, %v793_v46 }
  0x22   :  { %v813_v3 = vrot.slane %v812_v59, 2  ;;  %v802_v4 = vadd.f32 %v801_v58, %v800_v47  ;;  %v808_v7 = vrot.slane %v807_v56, 1  ;;  %v832_v11 = vcombine.low %v774_v50, %v781_v51 }
  0x23   :  { %v820_v9 = vrot.slane %v819_v62, 2  ;;  %v619_v12 = vrot.slane %v1063_v19, 1  ;;  %v640_v13 = vrot.slane %v1057_v6, 1  ;;  %v833_v16 = vcombine.low %v788_v54, %v795_v2 }
  0x24   :  { %v814_v15 = vadd.f32 %v813_v3, %v812_v59  ;;  %v626_v17 = vrot.slane %v1065_v22, 1  ;;  %v633_v5 = vrot.slane %v632_v60, 1  ;;  %v809_v10 = vadd.f32 %v808_v7, %v807_v56 }
  0x25   :  { %v821_v20 = vadd.f32 %v820_v9, %v819_v62  ;;  %v647_v21 = vrot.slane %v646_v61, 1  ;;  %v654_v14 = vrot.slane %v653_v63, 1  ;;  %v661_v23 = vrot.slane %v660_v0, 1 }
  0x26   :  { %v815_v24 = vrot.slane %v814_v15, 1  ;;  %v834_v26 = vcombine.low %v802_v4, %v809_v10  ;;  %v842_v27 = vrot.slane %v832_v11, %v1050_v55  ;;  %v849_v28 = vrot.slane %v833_v16, %v1050_v55 }
  0x27   :  { %v822_v25 = vrot.slane %v821_v20, 1  ;;  %v613_v29 = vadd.f32 %v612_v18, %v1055_v1  ;;  %v620_v31 = vadd.f32 %v619_v12, %v1063_v19  ;;  %v627_v32 = vadd.f32 %v626_v17, %v1065_v22 }
  0x28   :  { %v816_v30 = vadd.f32 %v815_v24, %v814_v15  ;;  %v641_v33 = vadd.f32 %v640_v13, %v1057_v6  ;;  %v634_v35 = vadd.f32 %v633_v5, %v632_v60  ;;  %v648_v36 = vadd.f32 %v647_v21, %v646_v61 }
  0x29   :  { %v823_v34 = vadd.f32 %v822_v25, %v821_v20  ;;  %v655_v37 = vadd.f32 %v654_v14, %v653_v63  ;;  %v662_v38 = vadd.f32 %v661_v23, %v660_v0  ;;  %v856_v40 = vrot.slane %v834_v26, %v1050_v55 }
  0x2a   :  { %v864_v41 = vcombine.low %v842_v27, %v849_v28  ;;  %v671_v43 = vcombine.low %v613_v29, %v620_v31  ;;  %v672_v1 = vcombine.low %v627_v32, %v634_v35  ;;  %v673_v18 = vcombine.low %v641_v33, %v648_v36 }
  0x2b   :  { %v835_v39 = vcombine.low %v816_v30, %v823_v34  ;;  %v674_v44 = vcombine.low %v655_v37, %v662_v38  ;;  %v901_v58 = vsub.s32 0, %v1033_v8  ;;  %v905_v59 = vsub.s32 1, %v1033_v8 }
  0x2c   :  { %v872_v22 = vrot.slane %v864_v41, %v1050_v55  ;;  %v681_v45 = vrot.slane %v671_v43, %v1050_v55  ;;  %v688_v46 = vrot.slane %v672_v1, %v1050_v55  ;;  %v695_v47 = vrot.slane %v673_v18, %v1050_v55 }
  0x2d   :  { %v863_v42 = vrot.slane %v835_v39, %v1050_v55  ;;  %v702_v48 = vrot.slane %v674_v44, %v1050_v55  ;;  %v909_v60 = vsub.s32 2, %v1033_v8  ;;  %v913_v61 = vsub.s32 3, %v1033_v8 }
  0x2e   :  { %v703_v51 = vcombine.low %v681_v45, %v688_v46  ;;  %v917_v63 = vsub.s32 4, %v1033_v8  ;;  %v921_v0 = vsub.s32 5, %v1033_v8  ;;  %v925_v7 = vsub.s32 6, %v1033_v8 }
  0x2f   :  { %v865_v19 = vcombine.low %v856_v40, %v863_v42  ;;  %v704_v52 = vcombine.low %v695_v47, %v702_v48  ;;  %v929_v17 = vsub.s32 7, %v1033_v8 }
  0x30   :  { %v711_v53 = vrot.slane %v703_v51, %v1050_v55 }
  0x31   :  { %v879_v6 = vrot.slane %v865_v19, %v1050_v55  ;;  %v718_v54 = vrot.slane %v704_v52, %v1050_v55 }
  0x33   :  { %v880_v49 = vcombine.low %v872_v22, %v879_v6  ;;  %v719_v57 = vcombine.low %v711_v53, %v718_v54 }
  0x35   :  { %v890_v50 = vadd.f32 1e-08, %v880_v49 }
  0x37   :  { %997 = vrcp.f32 %v890_v50 }
  0x41   :  { %v998_v56 = vpop.eup %997 }
  0x42   :  { %v892_v62 = vmul.f32 %v998_v56, %v719_v57 }
  0x44   :  { %v902_v2 = vrot.slane %v892_v62, %v901_v58  ;;  %v906_v3 = vrot.slane %v892_v62, %v905_v59  ;;  %v910_v4 = vrot.slane %v892_v62, %v909_v60  ;;  %v914_v55 = vrot.slane %v892_v62, %v913_v61 }
  0x45   :  { %v918_v9 = vrot.slane %v892_v62, %v917_v63  ;;  %v922_v16 = vrot.slane %v892_v62, %v921_v0  ;;  %v926_v20 = vrot.slane %v892_v62, %v925_v7  ;;  %v930_v23 = vrot.slane %v892_v62, %v929_v17 }
  0x46   :  { %v940_v11 = vsel %vm939_vm1, %v902_v2, 0.0  ;;  %v941_v12 = vsel %vm939_vm1, %v906_v3, 0.0  ;;  %v943_v13 = vsel %vm939_vm1, %v910_v4, 0.0  ;;  %v945_v5 = vsel %vm939_vm1, %v914_v55, 0.0 }
  0x47   :  { %v942_v15 = vadd.f32 %v941_v12, %v940_v11  ;;  %v947_v21 = vsel %vm939_vm1, %v918_v9, 0.0  ;;  %v949_v24 = vsel %vm939_vm1, %v922_v16, 0.0  ;;  %v951_v26 = vsel %vm939_vm1, %v926_v20, 0.0 }
  0x48   :  { %v953_v28 = vsel %vm939_vm1, %v930_v23, 0.0 }
  0x49   :  { %v944_v10 = vadd.f32 %v943_v13, %v942_v15 }
  0x4b   :  { %v946_v14 = vadd.f32 %v945_v5, %v944_v10 }
  0x4d   :  { %v948_v25 = vadd.f32 %v947_v21, %v946_v14 }
  0x4f   :  { %v950_v27 = vadd.f32 %v949_v24, %v948_v25 }
  0x51   :  { %v952_v29 = vadd.f32 %v951_v26, %v950_v27 }
  0x53   :  { %v954_v30 = vadd.f32 %v953_v28, %v952_v29 }
  0x55   :  { %955 = vadd.xlane.f32.xlu0 %v954_v30 }
  0xe2   :  { %v956_v8 = vpop.xlane.xlu0 %955 }
  0xe3   :  { %v957_v31 = vrot.slane %v956_v8, 4 }
  0xe5   :  { %v958_v32 = vadd.f32 %v957_v31, %v956_v8 }
  0xe7   :  { %v959_v33 = vrot.slane %v958_v32, 2 }
  0xe9   :  { %v960_v34 = vadd.f32 %v959_v33, %v958_v32 }
  0xeb   :  { %v961_v35 = vrot.slane %v960_v34, 1 }
  0xed   :  { %v962_v36 = vadd.f32 %v961_v35, %v960_v34 }
  0xef   :  { %991 = vpush %v962_v36 }
 0x120   :  { %s992_s1 = spop %991 }
 0x121   :  { %s966_s2 = smul.f32 0.0009765625, %s992_s1 }
 0x123   :  { %v967_v37 = vstv %s966_s2 }
 0x124   :  { %968 = vst [vmem:[%s1113_s3] sm:$0xff] %v967_v37 }

</bundles_post_ra>
